<compile_context>
chip_gen: v7x
topology: tpu7x:2x2x1
jax: 0.10.0
libtpu: 0.0.40
codegen_flags: <defaults>
</compile_context>

<pallas_src>
import functools
import math

import jax
import jax.numpy as jnp
from jax.experimental import pallas as pl
from jax.experimental.pallas import tpu as pltpu

_CPAD = 128   # lane width: every channel axis is padded to 128 lanes
_EPS = 1e-5   # BatchNorm1d default eps


# ----------------------------------------------------------------------------
# parameter construction (mirrors calculate_mask_index / creak_layer_mask)
# ----------------------------------------------------------------------------
def calculate_mask_index(kernel_length_now, largest_kernel_length):
    right = math.ceil((largest_kernel_length - 1) / 2) - math.ceil(
        (kernel_length_now - 1) / 2)
    left = largest_kernel_length - kernel_length_now - right
    return left, left + kernel_length_now


def init_os_layer_params(key, layer_parameters):
    """Concatenated masked Conv1d weight / bias / mask for one OS block."""
    k_max = layer_parameters[-1][-1]
    ws, bs, ms = [], [], []
    for (cin, cout, ks) in layer_parameters:
        key, kw, kb = jax.random.split(key, 3)
        bound = 1.0 / math.sqrt(cin * ks)  # PyTorch Conv1d default init bound
        w = jax.random.uniform(kw, (cout, cin, ks), jnp.float32, -bound, bound)
        b = jax.random.uniform(kb, (cout,), jnp.float32, -bound, bound)
        l, r = calculate_mask_index(ks, k_max)
        big = jnp.zeros((cout, cin, k_max), jnp.float32).at[:, :, l:r].set(w)
        msk = jnp.zeros((cout, cin, k_max), jnp.float32).at[:, :, l:r].set(1.0)
        ws.append(big)
        bs.append(b)
        ms.append(msk)
    W = jnp.concatenate(ws, axis=0)   # (Cout_total, Cin, k_max)
    B = jnp.concatenate(bs, axis=0)   # (Cout_total,)
    M = jnp.concatenate(ms, axis=0)   # (Cout_total, Cin, k_max)
    return key, W, B, M


def init_os_cnn_params(key, layer_parameter_list, n_class, few_shot):
    layers, bn = [], []
    for lp in layer_parameter_list:
        key, W, B, M = init_os_layer_params(key, lp)
        layers.append((W, B, M))
        cout = int(W.shape[0])
        bn.append((jnp.ones((cout,), jnp.float32),     # BN gamma (init 1)
                   jnp.zeros((cout,), jnp.float32)))   # BN beta  (init 0)
    params = {"layers": layers, "bn": bn}
    out_ch = sum(i[1] for i in layer_parameter_list[-1])
    if not few_shot:
        key, kw, kb = jax.random.split(key, 3)
        bound = 1.0 / math.sqrt(out_ch)  # PyTorch Linear default init bound
        params["hidden_w"] = jax.random.uniform(
            kw, (out_ch, n_class), jnp.float32, -bound, bound)  # = W_hidden.T
        params["hidden_b"] = jax.random.uniform(
            kb, (1, n_class), jnp.float32, -bound, bound)
    return params


# ----------------------------------------------------------------------------
# one-time prep: pack all params into a single compact (R, 128) slab
# ----------------------------------------------------------------------------
def _pad8(n):
    return ((n + 7) // 8) * 8


def prepare_os_cnn(params, few_shot, cpad=_CPAD):
    """Run ONCE.  Returns (slab, meta): a single f32 (R, cpad) parameter slab
    plus static row offsets.  Weight tap sections are stored compactly
    (ceil(Cin/8)*8 rows); the kernel reads (cpad, cpad) windows whose trailing
    rows multiply zero activation lanes, so no in-kernel padding is needed."""
    blocks, row, layer_meta = [], 0, []
    for (W, B, M), (gamma, beta) in zip(params["layers"], params["bn"]):
        W = W * M            # PyTorch forward: weight.data = weight * mask
        cout, cin, K = int(W.shape[0]), int(W.shape[1]), int(W.shape[2])
        assert cout <= cpad and cin <= cpad
        cin8 = _pad8(cin)
        tap_offs = []
        for k in range(K):   # per-tap (cin, cout) = W[:, :, k].T, lane-padded
            blk = jnp.zeros((cin8, cpad), jnp.float32
                            ).at[:cin, :cout].set(W[:, :, k].T)
            blocks.append(blk)
            tap_offs.append(row)
            row += cin8
        bias_row = row
        blocks.append(jnp.zeros((8, cpad), jnp.float32).at[0, :cout].set(B))
        row += 8
        gamma_row = row
        blocks.append(jnp.zeros((8, cpad), jnp.float32).at[0, :cout].set(gamma))
        row += 8
        beta_row = row
        blocks.append(jnp.zeros((8, cpad), jnp.float32).at[0, :cout].set(beta))
        row += 8
        layer_meta.append((K, tuple(tap_offs), bias_row, gamma_row, beta_row))

    last_cout = int(params["layers"][-1][0].shape[0])
    head_meta, n_out = None, last_cout
    if not few_shot:
        hw = params["hidden_w"]                      # (out_ch, n_class)
        out_ch, n_class = int(hw.shape[0]), int(hw.shape[1])
        assert out_ch == last_cout and n_class <= cpad
        hw_off = row
        blocks.append(jnp.zeros((_pad8(out_ch), cpad), jnp.float32
                                ).at[:out_ch, :n_class].set(hw))
        row += _pad8(out_ch)
        hb_row = row
        blocks.append(jnp.zeros((8, cpad), jnp.float32
                                ).at[0, :n_class].set(params["hidden_b"][0]))
        row += 8
        head_meta = (hw_off, hb_row)
        n_out = n_class

    # tail zeros so every (cpad)-row weight window is in-bounds
    w_offs = [o for (_, offs, _, _, _) in layer_meta for o in offs]
    if head_meta is not None:
        w_offs.append(head_meta[0])
    need = max(w_offs) + cpad
    if row < need:
        blocks.append(jnp.zeros((need - row, cpad), jnp.float32))
        row = need

    slab = jnp.concatenate(blocks, axis=0)           # (R, cpad) f32
    meta = {"layer_meta": tuple(layer_meta), "head_meta": head_meta,
            "n_out": n_out, "cpad": cpad}
    return jax.device_put(slab), meta


# ----------------------------------------------------------------------------
# fused kernel: [masked conv + BN(train, batch stats) + ReLU] x L -> pool -> FC
# ----------------------------------------------------------------------------
def _os_cnn_fused_kernel(x_ref, w_ref, o_ref, *, N, L, layer_meta, head_meta,
                         eps):
    cpad = x_ref.shape[-1]
    m = N * L
    inv_m = 1.0 / float(m)

    cur = x_ref[...]                                  # (N, L, cpad), f32

    for (K, tap_offs, bias_row, gamma_row, beta_row) in layer_meta:
        left = (K - 1) // 2
        right = K // 2
        # ConstantPad1d((K-1)//2, K//2): pure value-level pad, no scratch.
        if K == 1:
            padded = cur
        else:
            parts = []
            if left:
                parts.append(jnp.zeros((N, left, cpad), jnp.float32))
            parts.append(cur)
            if right:
                parts.append(jnp.zeros((N, right, cpad), jnp.float32))
            padded = jnp.concatenate(parts, axis=1)   # (N, L+K-1, cpad)

        # masked Conv1d as K accumulated (m,cpad)@(cpad,cpad) matmuls.
        conv = None
        for k in range(K):
            tap = padded[:, k:k + L, :].reshape(m, cpad)
            wk = w_ref[tap_offs[k]:tap_offs[k] + cpad, :]   # static window
            p = jnp.dot(tap, wk, preferred_element_type=jnp.float32)
            conv = p if conv is None else conv + p
        conv = conv + w_ref[bias_row:bias_row + 1, :]

        # BatchNorm1d (training mode, batch stats), one-pass statistics.
        s1 = jnp.sum(conv, axis=0, keepdims=True)
        s2 = jnp.sum(conv * conv, axis=0, keepdims=True)
        mean = s1 * inv_m
        var = s2 * inv_m - mean * mean
        scale = jax.lax.rsqrt(var + eps) * w_ref[gamma_row:gamma_row + 1, :]
        shift = w_ref[beta_row:beta_row + 1, :] - mean * scale
        # ReLU
        cur = jnp.maximum(conv * scale + shift, 0.0).reshape(N, L, cpad)

    # AdaptiveAvgPool1d(1) + squeeze(-1): mean over L (XLU reduce, no matmul).
    pooled = jnp.sum(cur, axis=1) * (1.0 / float(L))  # (N, cpad)

    if head_meta is None:
        o_ref[...] = pooled
    else:
        hw_off, hb_row = head_meta
        o_ref[...] = (jnp.dot(pooled, w_ref[hw_off:hw_off + cpad, :],
                              preferred_element_type=jnp.float32)
                      + w_ref[hb_row:hb_row + 1, :])


# ----------------------------------------------------------------------------
# per-call path: one jitted dispatch (tiny x layout fixup + one pallas_call)
# ----------------------------------------------------------------------------
def make_os_cnn_forward(meta):
    cpad = meta["cpad"]
    layer_meta = meta["layer_meta"]
    head_meta = meta["head_meta"]
    n_out = meta["n_out"]

    @jax.jit
    def forward(x_ncl, slab):
        """x_ncl: (N, C_in, L) -- PyTorch Conv1d convention."""
        N, c_in, L = x_ncl.shape
        # x is per-call data, so its (tiny) NCL->NLC + lane-pad stays here,
        # fused into the single jitted dispatch.
        x = jnp.transpose(x_ncl, (0, 2, 1)).astype(jnp.float32)
        x = jnp.pad(x, ((0, 0), (0, 0), (0, cpad - c_in)))

        kern = functools.partial(_os_cnn_fused_kernel, N=int(N), L=int(L),
                                 layer_meta=layer_meta, head_meta=head_meta,
                                 eps=_EPS)
        out_pad = pl.pallas_call(
            kern,
            out_shape=jax.ShapeDtypeStruct((int(N), cpad), jnp.float32),
            in_specs=[pl.BlockSpec(memory_space=pltpu.MemorySpace.VMEM),
                      pl.BlockSpec(memory_space=pltpu.MemorySpace.VMEM)],
            out_specs=pl.BlockSpec(memory_space=pltpu.MemorySpace.VMEM),
        )(x, slab)
        return out_pad[:, :n_out]   # slice lane padding back off

    return forward


# ----------------------------------------------------------------------------
if __name__ == "__main__":
    key = jax.random.PRNGKey(0)

    # Omni-scale parameter list: each block is a set of (in, out, kernel)
    # branches fused into one masked conv of the largest kernel length.
    layer_parameter_list = [
        [(1, 6, 1), (1, 6, 2), (1, 6, 3)],      # block 1: 18 output channels
        [(18, 8, 1), (18, 8, 2), (18, 8, 3)],   # block 2: 24 output channels
    ]
    n_class = 3
    few_shot = False  # exercise the final Linear head as well

    N, C_in, L = 2, 1, 16
    key, kx = jax.random.split(key)
    x = jax.random.normal(kx, (N, C_in, L), jnp.float32)

    params = init_os_cnn_params(key, layer_parameter_list, n_class, few_shot)
    slab, meta = prepare_os_cnn(params, few_shot)       # one-time prep
    forward = make_os_cnn_forward(meta)

    out = forward(x, slab)
    jax.block_until_ready(out)
    assert out.shape == (N, n_class), out.shape
    print("KERNEL_OK")
</pallas_src>

<mosaic_0001>
module attributes {stable_mosaic.version = 11 : i64} {
  func.func @_os_cnn_fused_kernel(%arg0: memref<2x16x128xf32, #tpu.memory_space<vmem>>, %arg1: memref<272x128xf32, #tpu.memory_space<vmem>>, %arg2: memref<2x128xf32, #tpu.memory_space<vmem>>) attributes {dimension_semantics = [], scalar_prefetch = 0 : i64, scratch_operands = 0 : i64, tpu.core_type = #tpu.core_type<tc>} {
    %c0 = arith.constant 0 : index
    %c0_0 = arith.constant 0 : index
    %c0_1 = arith.constant 0 : index
    %0 = vector.load %arg0[%c0, %c0_0, %c0_1] : memref<2x16x128xf32, #tpu.memory_space<vmem>>, vector<2x16x128xf32>
    %cst = arith.constant 0.000000e+00 : f32
    %1 = vector.broadcast %cst : f32 to vector<2x1x128xf32>
    %cst_2 = arith.constant 0.000000e+00 : f32
    %2 = vector.broadcast %cst_2 : f32 to vector<2x1x128xf32>
    %3 = tpu.concatenate %1, %0, %2 in 1 : vector<2x1x128xf32>, vector<2x16x128xf32>, vector<2x1x128xf32> -> vector<2x18x128xf32>
    %4 = vector.extract_strided_slice %3 {offsets = [0, 0, 0], sizes = [2, 16, 128], strides = [1, 1, 1]} : vector<2x18x128xf32> to vector<2x16x128xf32>
    %5 = vector.shape_cast %4 : vector<2x16x128xf32> to vector<32x128xf32>
    %c0_3 = arith.constant 0 : index
    %c0_4 = arith.constant 0 : index
    %6 = vector.load %arg1[%c0_3, %c0_4] : memref<272x128xf32, #tpu.memory_space<vmem>>, vector<128x128xf32>
    %cst_5 = arith.constant dense<0.000000e+00> : vector<32x128xf32>
    %7 = tpu.matmul %5, %6, %cst_5 {dimension_numbers = #tpu.dot_dimension_numbers<[1], [0], [0], [1], [0, 0, 1, 1], [], []>} : vector<32x128xf32>, vector<128x128xf32>, vector<32x128xf32> -> vector<32x128xf32>
    %8 = vector.extract_strided_slice %3 {offsets = [0, 1, 0], sizes = [2, 16, 128], strides = [1, 1, 1]} : vector<2x18x128xf32> to vector<2x16x128xf32>
    %9 = vector.shape_cast %8 : vector<2x16x128xf32> to vector<32x128xf32>
    %c8 = arith.constant 8 : index
    %c0_6 = arith.constant 0 : index
    %10 = vector.load %arg1[%c8, %c0_6] : memref<272x128xf32, #tpu.memory_space<vmem>>, vector<128x128xf32>
    %cst_7 = arith.constant dense<0.000000e+00> : vector<32x128xf32>
    %11 = tpu.matmul %9, %10, %cst_7 {dimension_numbers = #tpu.dot_dimension_numbers<[1], [0], [0], [1], [0, 0, 1, 1], [], []>} : vector<32x128xf32>, vector<128x128xf32>, vector<32x128xf32> -> vector<32x128xf32>
    %12 = arith.addf %7, %11 : vector<32x128xf32>
    %13 = vector.extract_strided_slice %3 {offsets = [0, 2, 0], sizes = [2, 16, 128], strides = [1, 1, 1]} : vector<2x18x128xf32> to vector<2x16x128xf32>
    %14 = vector.shape_cast %13 : vector<2x16x128xf32> to vector<32x128xf32>
    %c16 = arith.constant 16 : index
    %c0_8 = arith.constant 0 : index
    %15 = vector.load %arg1[%c16, %c0_8] : memref<272x128xf32, #tpu.memory_space<vmem>>, vector<128x128xf32>
    %cst_9 = arith.constant dense<0.000000e+00> : vector<32x128xf32>
    %16 = tpu.matmul %14, %15, %cst_9 {dimension_numbers = #tpu.dot_dimension_numbers<[1], [0], [0], [1], [0, 0, 1, 1], [], []>} : vector<32x128xf32>, vector<128x128xf32>, vector<32x128xf32> -> vector<32x128xf32>
    %17 = arith.addf %12, %16 : vector<32x128xf32>
    %c24 = arith.constant 24 : index
    %c0_10 = arith.constant 0 : index
    %18 = vector.load %arg1[%c24, %c0_10] : memref<272x128xf32, #tpu.memory_space<vmem>>, vector<1x128xf32>
    %19 = vector.broadcast %18 : vector<1x128xf32> to vector<32x128xf32>
    %20 = arith.addf %17, %19 : vector<32x128xf32>
    %cst_11 = arith.constant dense<0.000000e+00> : vector<128xf32>
    %21 = vector.multi_reduction <add>, %20, %cst_11 [0] : vector<32x128xf32> to vector<128xf32>
    %22 = vector.shape_cast %21 : vector<128xf32> to vector<1x128xf32>
    %23 = arith.mulf %20, %20 : vector<32x128xf32>
    %cst_12 = arith.constant dense<0.000000e+00> : vector<128xf32>
    %24 = vector.multi_reduction <add>, %23, %cst_12 [0] : vector<32x128xf32> to vector<128xf32>
    %25 = vector.shape_cast %24 : vector<128xf32> to vector<1x128xf32>
    %cst_13 = arith.constant 3.125000e-02 : f32
    %26 = vector.broadcast %cst_13 : f32 to vector<1x128xf32>
    %27 = arith.mulf %22, %26 : vector<1x128xf32>
    %cst_14 = arith.constant 3.125000e-02 : f32
    %28 = vector.broadcast %cst_14 : f32 to vector<1x128xf32>
    %29 = arith.mulf %25, %28 : vector<1x128xf32>
    %30 = arith.mulf %27, %27 : vector<1x128xf32>
    %31 = arith.subf %29, %30 : vector<1x128xf32>
    %cst_15 = arith.constant 9.99999974E-6 : f32
    %32 = vector.broadcast %cst_15 : f32 to vector<1x128xf32>
    %33 = arith.addf %31, %32 : vector<1x128xf32>
    %34 = math.rsqrt %33 : vector<1x128xf32>
    %c32 = arith.constant 32 : index
    %c0_16 = arith.constant 0 : index
    %35 = vector.load %arg1[%c32, %c0_16] : memref<272x128xf32, #tpu.memory_space<vmem>>, vector<1x128xf32>
    %36 = arith.mulf %34, %35 : vector<1x128xf32>
    %c40 = arith.constant 40 : index
    %c0_17 = arith.constant 0 : index
    %37 = vector.load %arg1[%c40, %c0_17] : memref<272x128xf32, #tpu.memory_space<vmem>>, vector<1x128xf32>
    %38 = arith.mulf %27, %36 : vector<1x128xf32>
    %39 = arith.subf %37, %38 : vector<1x128xf32>
    %40 = vector.broadcast %36 : vector<1x128xf32> to vector<32x128xf32>
    %41 = arith.mulf %20, %40 : vector<32x128xf32>
    %42 = vector.broadcast %39 : vector<1x128xf32> to vector<32x128xf32>
    %43 = arith.addf %41, %42 : vector<32x128xf32>
    %cst_18 = arith.constant 0.000000e+00 : f32
    %44 = vector.broadcast %cst_18 : f32 to vector<32x128xf32>
    %45 = arith.maximumf %43, %44 : vector<32x128xf32>
    %46 = vector.shape_cast %45 : vector<32x128xf32> to vector<2x16x128xf32>
    %cst_19 = arith.constant 0.000000e+00 : f32
    %47 = vector.broadcast %cst_19 : f32 to vector<2x1x128xf32>
    %cst_20 = arith.constant 0.000000e+00 : f32
    %48 = vector.broadcast %cst_20 : f32 to vector<2x1x128xf32>
    %49 = tpu.concatenate %47, %46, %48 in 1 : vector<2x1x128xf32>, vector<2x16x128xf32>, vector<2x1x128xf32> -> vector<2x18x128xf32>
    %50 = vector.extract_strided_slice %49 {offsets = [0, 0, 0], sizes = [2, 16, 128], strides = [1, 1, 1]} : vector<2x18x128xf32> to vector<2x16x128xf32>
    %51 = vector.shape_cast %50 : vector<2x16x128xf32> to vector<32x128xf32>
    %c48 = arith.constant 48 : index
    %c0_21 = arith.constant 0 : index
    %52 = vector.load %arg1[%c48, %c0_21] : memref<272x128xf32, #tpu.memory_space<vmem>>, vector<128x128xf32>
    %cst_22 = arith.constant dense<0.000000e+00> : vector<32x128xf32>
    %53 = tpu.matmul %51, %52, %cst_22 {dimension_numbers = #tpu.dot_dimension_numbers<[1], [0], [0], [1], [0, 0, 1, 1], [], []>} : vector<32x128xf32>, vector<128x128xf32>, vector<32x128xf32> -> vector<32x128xf32>
    %54 = vector.extract_strided_slice %49 {offsets = [0, 1, 0], sizes = [2, 16, 128], strides = [1, 1, 1]} : vector<2x18x128xf32> to vector<2x16x128xf32>
    %55 = vector.shape_cast %54 : vector<2x16x128xf32> to vector<32x128xf32>
    %c72 = arith.constant 72 : index
    %c0_23 = arith.constant 0 : index
    %56 = vector.load %arg1[%c72, %c0_23] : memref<272x128xf32, #tpu.memory_space<vmem>>, vector<128x128xf32>
    %cst_24 = arith.constant dense<0.000000e+00> : vector<32x128xf32>
    %57 = tpu.matmul %55, %56, %cst_24 {dimension_numbers = #tpu.dot_dimension_numbers<[1], [0], [0], [1], [0, 0, 1, 1], [], []>} : vector<32x128xf32>, vector<128x128xf32>, vector<32x128xf32> -> vector<32x128xf32>
    %58 = arith.addf %53, %57 : vector<32x128xf32>
    %59 = vector.extract_strided_slice %49 {offsets = [0, 2, 0], sizes = [2, 16, 128], strides = [1, 1, 1]} : vector<2x18x128xf32> to vector<2x16x128xf32>
    %60 = vector.shape_cast %59 : vector<2x16x128xf32> to vector<32x128xf32>
    %c96 = arith.constant 96 : index
    %c0_25 = arith.constant 0 : index
    %61 = vector.load %arg1[%c96, %c0_25] : memref<272x128xf32, #tpu.memory_space<vmem>>, vector<128x128xf32>
    %cst_26 = arith.constant dense<0.000000e+00> : vector<32x128xf32>
    %62 = tpu.matmul %60, %61, %cst_26 {dimension_numbers = #tpu.dot_dimension_numbers<[1], [0], [0], [1], [0, 0, 1, 1], [], []>} : vector<32x128xf32>, vector<128x128xf32>, vector<32x128xf32> -> vector<32x128xf32>
    %63 = arith.addf %58, %62 : vector<32x128xf32>
    %c120 = arith.constant 120 : index
    %c0_27 = arith.constant 0 : index
    %64 = vector.load %arg1[%c120, %c0_27] : memref<272x128xf32, #tpu.memory_space<vmem>>, vector<1x128xf32>
    %65 = vector.broadcast %64 : vector<1x128xf32> to vector<32x128xf32>
    %66 = arith.addf %63, %65 : vector<32x128xf32>
    %cst_28 = arith.constant dense<0.000000e+00> : vector<128xf32>
    %67 = vector.multi_reduction <add>, %66, %cst_28 [0] : vector<32x128xf32> to vector<128xf32>
    %68 = vector.shape_cast %67 : vector<128xf32> to vector<1x128xf32>
    %69 = arith.mulf %66, %66 : vector<32x128xf32>
    %cst_29 = arith.constant dense<0.000000e+00> : vector<128xf32>
    %70 = vector.multi_reduction <add>, %69, %cst_29 [0] : vector<32x128xf32> to vector<128xf32>
    %71 = vector.shape_cast %70 : vector<128xf32> to vector<1x128xf32>
    %cst_30 = arith.constant 3.125000e-02 : f32
    %72 = vector.broadcast %cst_30 : f32 to vector<1x128xf32>
    %73 = arith.mulf %68, %72 : vector<1x128xf32>
    %cst_31 = arith.constant 3.125000e-02 : f32
    %74 = vector.broadcast %cst_31 : f32 to vector<1x128xf32>
    %75 = arith.mulf %71, %74 : vector<1x128xf32>
    %76 = arith.mulf %73, %73 : vector<1x128xf32>
    %77 = arith.subf %75, %76 : vector<1x128xf32>
    %cst_32 = arith.constant 9.99999974E-6 : f32
    %78 = vector.broadcast %cst_32 : f32 to vector<1x128xf32>
    %79 = arith.addf %77, %78 : vector<1x128xf32>
    %80 = math.rsqrt %79 : vector<1x128xf32>
    %c128 = arith.constant 128 : index
    %c0_33 = arith.constant 0 : index
    %81 = vector.load %arg1[%c128, %c0_33] : memref<272x128xf32, #tpu.memory_space<vmem>>, vector<1x128xf32>
    %82 = arith.mulf %80, %81 : vector<1x128xf32>
    %c136 = arith.constant 136 : index
    %c0_34 = arith.constant 0 : index
    %83 = vector.load %arg1[%c136, %c0_34] : memref<272x128xf32, #tpu.memory_space<vmem>>, vector<1x128xf32>
    %84 = arith.mulf %73, %82 : vector<1x128xf32>
    %85 = arith.subf %83, %84 : vector<1x128xf32>
    %86 = vector.broadcast %82 : vector<1x128xf32> to vector<32x128xf32>
    %87 = arith.mulf %66, %86 : vector<32x128xf32>
    %88 = vector.broadcast %85 : vector<1x128xf32> to vector<32x128xf32>
    %89 = arith.addf %87, %88 : vector<32x128xf32>
    %cst_35 = arith.constant 0.000000e+00 : f32
    %90 = vector.broadcast %cst_35 : f32 to vector<32x128xf32>
    %91 = arith.maximumf %89, %90 : vector<32x128xf32>
    %92 = vector.shape_cast %91 : vector<32x128xf32> to vector<2x16x128xf32>
    %cst_36 = arith.constant dense<0.000000e+00> : vector<2x128xf32>
    %93 = vector.multi_reduction <add>, %92, %cst_36 [1] : vector<2x16x128xf32> to vector<2x128xf32>
    %cst_37 = arith.constant 6.250000e-02 : f32
    %94 = vector.broadcast %cst_37 : f32 to vector<2x128xf32>
    %95 = arith.mulf %93, %94 : vector<2x128xf32>
    %c144 = arith.constant 144 : index
    %c0_38 = arith.constant 0 : index
    %96 = vector.load %arg1[%c144, %c0_38] : memref<272x128xf32, #tpu.memory_space<vmem>>, vector<128x128xf32>
    %cst_39 = arith.constant dense<0.000000e+00> : vector<2x128xf32>
    %97 = tpu.matmul %95, %96, %cst_39 {dimension_numbers = #tpu.dot_dimension_numbers<[1], [0], [0], [1], [0, 0, 1, 1], [], []>} : vector<2x128xf32>, vector<128x128xf32>, vector<2x128xf32> -> vector<2x128xf32>
    %c168 = arith.constant 168 : index
    %c0_40 = arith.constant 0 : index
    %98 = vector.load %arg1[%c168, %c0_40] : memref<272x128xf32, #tpu.memory_space<vmem>>, vector<1x128xf32>
    %99 = vector.broadcast %98 : vector<1x128xf32> to vector<2x128xf32>
    %100 = arith.addf %97, %99 : vector<2x128xf32>
    %c0_41 = arith.constant 0 : index
    %c0_42 = arith.constant 0 : index
    %101 = vector.load %arg2[%c0_41, %c0_42] : memref<2x128xf32, #tpu.memory_space<vmem>>, vector<2x128xf32>
    tpu.vector_store %arg2[%c0_41, %c0_42], %100 {strides = array<i32>} : memref<2x128xf32, #tpu.memory_space<vmem>>, vector<2x128xf32>,
    return
  }
}

</mosaic_0001>

<bundles_post_ra>
// kernel: forward.1
= control target key start
LH: loop header
LB: loop body
LE: loop exit
PB: predicated region body
PF: predicated region fallthrough
CT: control target
= control target key end

     0   :  { %7 = vsyncpa [#allocation3], 0  ;;  %s1955_s0 = inlined_call_operand.vmem [shape: f32[2,16,128], index: 0, kind: input, shape index: {}]   ;;  %s1956_s1 = inlined_call_operand.hbm [shape: f32[272,128], index: 1, kind: input, shape index: {}]   ;;  %s1957_s2 = inlined_call_operand.hbm [shape: f32[2,128], index: 2, kind: output, shape index: {}]  }
   0x1   :  { %8 = vsyncpa [#allocation4], 0  ;;  %s1677_s9 = smov [#allocation2]   ;;  %s1629_s13 = scalar_lea.hbm %s1956_s1, 4352 }
   0x2   :  { %s16_s10 = sshll.u32 %s1677_s9, 4  ;;  %p1630_p0 = scmp.ne.s32.totalorder %s1956_s1, %s1629_s13  ;;  %s17_s10 = int_to_ptr.vmem [resolvable:$true] %s16_s10 }
   0x3   :  { %p1633_p1 = scmp.lt.u32.totalorder %s1629_s13, %s1956_s1 }
   0x5   :  { %p1635_p2 = pnand %p1633_p1, %p1630_p0 }
   0x7   :  { %1638 = shalt.err (!%p1635_p2)
}
   0x8   :  { %s1639_s18 = scalar_lea.vmem %s17_s10, 4352  ;;  %p1644_p4 = scmp.lt.s32.totalorder %s17_s10, %s17_s10 }
   0x9   :  { %p1640_p3 = scmp.ne.s32.totalorder %s17_s10, %s1639_s18  ;;  %p1645_p5 = scmp.lt.s32.totalorder %s1639_s18, %s1639_s18 }
   0xb   :  { %p1646_p6 = por %p1645_p5, %p1644_p4 }
   0xd   :  { %p1647_p7 = pnand %p1646_p6, %p1640_p3 }
   0xf   :  { %1650 = shalt.err (!%p1647_p7)
}
  0x10   :  { %s1678_s19 = smov 128   ;;  %s1679_s20 = smov 8  }
  0x11   :  { %22 = dma.hbm_to_vmem [thread:$0]  %s1956_s1, 4352, %s17_s10, [#allocation3], %s1678_s19, %s1678_s19, %s1679_s20  }
  0x12   :  { %1673 = dma.done.wait [#allocation3], 4352  }
  0x13   :  { %1674 = vsyncadd [#allocation3], 4294962944  ;;  %v1711_v0 = vld [vmem:[#allocation2 + $0x8] sm:$0xff]  ;;  %v1713_v1 = vld [vmem:[#allocation2 + $0x10] sm:$0xff]  ;;  %vm34_vm0 = vcmask 1040384   ;;  %vm71_vm1 = vcmask 1046528  }
  0x14   :  { %v1715_v2 = vld [vmem:[#allocation2 + $0x18] sm:$0xff]  ;;  %v1386_v3 = vpack.c.bf16 %v1713_v1, %v1711_v0  ;;  %v1719_v4 = vld [vmem:[#allocation2 + $0x20] sm:$0xff]  ;;  %v1723_v6 = vld [vmem:[#allocation2 + $0x28] sm:$0xff]  ;;  %vm257_vm2 = vcmask 1045504   ;;  %vm1681_vm4 = vmmov 0   ;;  %vm886_vm5 = vcmask 1041409  }
  0x15   :  { %v1390_v5 = vpack.c.bf16 %v1719_v4, %v1715_v2  ;;  %v1725_v7 = vld [vmem:[#allocation2 + $0x30] sm:$0xff]  ;;  %v1727_v8 = vld [vmem:[#allocation2 + $0x48] sm:$0xff]  ;;  %v1731_v10 = vld [vmem:[#allocation2 + $0x58] sm:$0xff]  ;;  %v1422_v53 = vpack.c.bf16 %v1715_v2, %v1713_v1  ;;  %v1426_v56 = vpack.c.bf16 %v1723_v6, %v1719_v4 }
  0x16   :  { %1387 = vmatprep.subr.bf16.mxu0 %v1386_v3  ;;  %v1729_v9 = vld [vmem:[#allocation2 + $0x50] sm:$0xff]  ;;  %v1735_v12 = vld [vmem:[#allocation2 + $0x60] sm:$0xff]  ;;  %v1394_v13 = vpack.c.bf16 %v1725_v7, %v1723_v6  ;;  %v1739_v14 = vld [vmem:[#allocation2 + $0x38] sm:$0xff] }
  0x17   :  { %1389 = vmatpush3.bf16.msra.mxu0 %v1386_v3  ;;  %v1402_v11 = vpack.c.bf16 %v1729_v9, %v1727_v8  ;;  %v1741_v15 = vld [vmem:[#allocation2 + $0x40] sm:$0xff]  ;;  %v1406_v17 = vpack.c.bf16 %v1735_v12, %v1731_v10  ;;  %v27_v18 = vld [vmem:[%s1955_s0 + $0x8] sm:$0xff]  ;;  %v28_v20 = vld [vmem:[%s1955_s0 + $0x10] sm:$0xff]  ;;  %v1823_v58 = vpack.c.bf16 %v1739_v14, %v1725_v7  ;;  %v1834_v60 = vpack.c.bf16 %v1731_v10, %v1729_v9 }
  0x18   :  { %1391 = vmatprep.subr.bf16.mxu0 %v1390_v5  ;;  %v26_v16 = vld [vmem:[%s1955_s0] sm:$0xff]  ;;  %v29_v21 = vld [vmem:[%s1955_s0 + $0x18] sm:$0xff]  ;;  %v1759_v22 = vld [vmem:[#allocation2 + $0x68] sm:$0xff]  ;;  %v36_v24 = vrot.slane %v27_v18, 7  ;;  %v1767_v26 = vrot.slane %v28_v20, 7  ;;  %v1398_v28 = vpack.c.bf16 %v1741_v15, %v1739_v14  ;;  %v1828_v59 = vpack.c.bf16 %v1727_v8, %v1741_v15  ;;  %s1683_s0 = smov [#allocation5]  }
  0x19   :  { %v1751_v19 = vrot.slane %v26_v16, 7  ;;  %1483 = vmatprep.subr.bf16.mxu1 %v1402_v11  ;;  %v1761_v23 = vld [vmem:[#allocation2 + $0x70] sm:$0xff]  ;;  %v39_v27 = vrot.slane %v29_v21, 7  ;;  %v1779_v33 = vld [vmem:[#allocation2 + $0x78] sm:$0xff]  ;;  %v1781_v34 = vld [vmem:[#allocation2 + $0x80] sm:$0xff]  ;;  %v1840_v61 = vpack.c.bf16 %v1759_v22, %v1735_v12  ;;  %s966_s30 = sshll.u32 %s1683_s0, 4  ;;  %s967_s30 = int_to_ptr.vmem [resolvable:$true] %s966_s30 }
  0x1a   :  { %1485 = vmatpush3.bf16.msra.mxu1 %v1402_v11  ;;  %v1410_v31 = vpack.c.bf16 %v1761_v23, %v1759_v22  ;;  %v48_v37 = vsel %vm34_vm0, 0.0, %v1767_v26  ;;  %v1414_v42 = vpack.c.bf16 %v1781_v34, %v1779_v33  ;;  %v1801_v45 = vsel %vm34_vm0, %v36_v24, 0.0  ;;  %v51_v46 = vld [vmem:[#allocation2] sm:$0xff]  ;;  %vm1814_vm3 = vmneg %vm34_vm0  ;;  %v287_v2 = vld [vmem:[#allocation2 + $0x88] sm:$0xff]  ;;  %s1651_s3 = scalar_lea.vmem %s967_s30, 32  ;;  %p1656_p9 = scmp.lt.s32.totalorder %s967_s30, %s967_s30 }
  0x1b   :  { %1393 = vmatpush3.bf16.msra.mxu0 %v1390_v5  ;;  %v1765_v25 = vsel %vm34_vm0, 0.0, %v1751_v19  ;;  %1487 = vmatprep.subr.bf16.mxu1 %v1406_v17  ;;  %v1773_v29 = vsel %vm34_vm0, %v1751_v19, %v36_v24  ;;  %v1786_v36 = vsel %vm34_vm0, %v1767_v26, %v39_v27  ;;  %v50_v38 = vsel %vm34_vm0, %v39_v27, 0.0  ;;  %v471_v6 = vld [vmem:[#allocation2 + $0x90] sm:$0xff]  ;;  %v472_v8 = vld [vmem:[#allocation2 + $0x98] sm:$0xff]  ;;  %v473_v9 = vld [vmem:[#allocation2 + $0xa0] sm:$0xff]  ;;  %p1652_p8 = scmp.ne.s32.totalorder %s967_s30, %s1651_s3  ;;  %p1657_p10 = scmp.lt.s32.totalorder %s1651_s3, %s1651_s3 }
  0x1c   :  { %1395 = vmatprep.subr.bf16.mxu0 %v1394_v13  ;;  %v72_v30 = vrot.slane %v1765_v25, 1  ;;  %v73_v32 = vrot.slane %v1773_v29, 1  ;;  %v263_v39 = vrot.slane %v48_v37, 2  ;;  %v264_v40 = vrot.slane %v1786_v36, 2  ;;  %v493_v12 = vld [vmem:[#allocation2 + $0xb0] sm:$0xff]  ;;  %v494_v14 = vld [vmem:[#allocation2 + $0xb8] sm:$0xff] }
  0x1d   :  { %v266_v41 = vrot.slane %v50_v38, 2  ;;  %v75_v47 = vrot.slane %v1801_v45, 1  ;;  %v1418_v48 = vpack.c.bf16 %v1711_v0, %v51_v46  ;;  %v77_v49 = vrot.slane %v48_v37, 1  ;;  %v1878_v15 = vld [vmem:[#allocation2 + $0xc0] sm:$0xff]  ;;  %v979_v20 = vld [vmem:[#allocation2 + $0x18] ss:$0 sm:$0xff]  ;;  %p1658_p11 = por %p1657_p10, %p1656_p9 }
  0x1e   :  { %1489 = vmatpush3.bf16.msra.mxu1 %v1406_v17  ;;  %v74_v35 = vsel %vm71_vm1, %v72_v30, %v73_v32  ;;  %v1795_v43 = vsel %vm257_vm2, %v263_v39, %v264_v40  ;;  %v78_v50 = vrot.slane %v1786_v36, 1  ;;  %v80_v52 = vrot.slane %v50_v38, 1  ;;  %v693_v57 = vld [vmem:[#allocation2 + $0xc8] sm:$0xff] }
  0x1f   :  { %1397 = vmatpush3.bf16.msra.mxu0 %v1394_v13  ;;  %1491 = vmatprep.subr.bf16.mxu1 %v1410_v31  ;;  %v1798_v44 = vsel %vm257_vm2, %v264_v40, %v266_v41  ;;  %v76_v51 = vsel %vm71_vm1, %v73_v32, %v75_v47  ;;  %v1846_v62 = vpack.c.bf16 %v1779_v33, %v1761_v23  ;;  %v258_v63 = vrot.slane %v1765_v25, 2  ;;  %p1659_p12 = pnand %p1658_p11, %p1652_p8 }
  0x20   :  { %1399 = vmatprep.subr.bf16.mxu0 %v1398_v28  ;;  %1155 = vmatprep.mubr.f32.mxu0 %v74_v35  ;;  %v79_v54 = vsel %vm71_vm1, %v77_v49, %v78_v50  ;;  %v81_v55 = vsel %vm71_vm1, %v78_v50, %v80_v52  ;;  %v259_v0 = vrot.slane %v1773_v29, 2  ;;  %v1869_v3 = vpack.c.bf16 %v287_v2, %v1781_v34 }
  0x21   :  { %v261_v4 = vrot.slane %v1801_v45, 2  ;;  %v1498_v7 = vpack.c.bf16 %v471_v6, %v287_v2  ;;  %v1502_v10 = vpack.c.bf16 %v473_v9, %v472_v8  ;;  %v1510_v16 = vpack.c.bf16 %v1878_v15, %v494_v14 }
  0x22   :  { %1493 = vmatpush3.bf16.msra.mxu1 %v1410_v31  ;;  %v260_v1 = vsel %vm257_vm2, %v258_v63, %v259_v0 }
  0x23   :  { %1401 = vmatpush3.bf16.msra.mxu0 %v1398_v28  ;;  %1495 = vmatprep.subr.bf16.mxu1 %v1414_v42  ;;  %v262_v5 = vsel %vm257_vm2, %v259_v0, %v261_v4  ;;  %v414_v0 = vld [vmem:[#allocation2 + $0x20] sm:$0x1] }
  0x24   :  { %1403 = vmatprep.subr.bf16.mxu0 %v1402_v11 }
  0x26   :  { %1497 = vmatpush3.bf16.msra.mxu1 %v1414_v42 }
  0x27   :  { %1405 = vmatpush3.bf16.msra.mxu0 %v1402_v11  ;;  %1499 = vmatprep.subr.bf16.mxu1 %v1498_v7  ;;  %v474_v11 = vld [vmem:[#allocation2 + $0xa8] sm:$0xff] }
  0x28   :  { %1407 = vmatprep.subr.bf16.mxu0 %v1406_v17  ;;  %v1506_v13 = vpack.c.bf16 %v493_v12, %v474_v11  ;;  %v1884_v18 = vpack.c.bf16 %v474_v11, %v473_v9 }
  0x2a   :  { %1501 = vmatpush3.bf16.msra.mxu1 %v1498_v7 }
  0x2b   :  { %1409 = vmatpush3.bf16.msra.mxu0 %v1406_v17  ;;  %1503 = vmatprep.subr.bf16.mxu1 %v1502_v10  ;;  %v1882_v17 = vpack.c.bf16 %v472_v8, %v471_v6 }
  0x2c   :  { %1411 = vmatprep.subr.bf16.mxu0 %v1410_v31 }
  0x2e   :  { %1505 = vmatpush3.bf16.msra.mxu1 %v1502_v10 }
  0x2f   :  { %1413 = vmatpush3.bf16.msra.mxu0 %v1410_v31  ;;  %1507 = vmatprep.subr.bf16.mxu1 %v1506_v13 }
  0x30   :  { %1415 = vmatprep.subr.bf16.mxu0 %v1414_v42 }
  0x32   :  { %1509 = vmatpush3.bf16.msra.mxu1 %v1506_v13 }
  0x33   :  { %1417 = vmatpush3.bf16.msra.mxu0 %v1414_v42  ;;  %1511 = vmatprep.subr.bf16.mxu1 %v1510_v16 }
  0x34   :  { %1419 = vmatprep.subr.bf16.mxu0 %v1418_v48 }
  0x36   :  { %1156 = vmatmul.mubr.f32.vlgmr.msra.gmra.mrb[0].mxu0 %v76_v51  ;;  %1513 = vmatpush3.bf16.msra.mxu1 %v1510_v16 }
  0x37   :  { %1421 = vmatpush3.bf16.msra.mxu0 %v1418_v48  ;;  %1158 = vmatprep.mubr.f32.mxu0 %v79_v54 }
  0x38   :  { %1423 = vmatprep.subr.bf16.mxu0 %v1422_v53  ;;  %1515 = vmatprep.subr.bf16.mxu1 %v1823_v58 }
  0x3a   :  { %1159 = vmatmul.mubr.f32.gmra.mrb[2].mxu0 %v81_v55 }
  0x3b   :  { %1425 = vmatpush3.bf16.msra.mxu0 %v1422_v53  ;;  %1193 = vmatprep.mubr.msk.f32.mxu0 %vm1814_vm3, %v1751_v19  ;;  %v1886_v19 = vpack.c.bf16 %v494_v14, %v493_v12 }
  0x3c   :  { %1427 = vmatprep.subr.bf16.mxu0 %v1426_v56 }
  0x3f   :  { %1429 = vmatpush3.bf16.msra.mxu0 %v1426_v56 }
  0x40   :  { %1431 = vmatprep.subr.bf16.mxu0 %v1823_v58 }
  0x43   :  { %1433 = vmatpush3.bf16.msra.mxu0 %v1823_v58 }
  0x44   :  { %1435 = vmatprep.subr.bf16.mxu0 %v1828_v59 }
  0x47   :  { %1437 = vmatpush3.bf16.msra.mxu0 %v1828_v59 }
  0x48   :  { %1439 = vmatprep.subr.bf16.mxu0 %v1834_v60 }
  0x4b   :  { %1441 = vmatpush3.bf16.msra.mxu0 %v1834_v60 }
  0x4c   :  { %1443 = vmatprep.subr.bf16.mxu0 %v1840_v61 }
  0x4f   :  { %1445 = vmatpush3.bf16.msra.mxu0 %v1840_v61 }
  0x50   :  { %1447 = vmatprep.subr.bf16.mxu0 %v1846_v62 }
  0x53   :  { %1449 = vmatpush3.bf16.msra.mxu0 %v1846_v62 }
  0x54   :  { %1451 = vmatprep.subr.bf16.mxu0 %v1422_v53 }
  0x56   :  { %1194 = vmatmul.mubr.f32.vlgmr.msra.gmra.mrb[0].mxu0 %v1773_v29 }
  0x57   :  { %1453 = vmatpush3.bf16.msra.mxu0 %v1422_v53  ;;  %1196 = vmatprep.mubr.msk.f32.mxu0 %vm1814_vm3, %v1767_v26 }
  0x58   :  { %1455 = vmatprep.subr.bf16.mxu0 %v1426_v56 }
  0x5a   :  { %1197 = vmatmul.mubr.f32.gmra.mrb[2].mxu0 %v1786_v36 }
  0x5b   :  { %1457 = vmatpush3.bf16.msra.mxu0 %v1426_v56  ;;  %1231 = vmatprep.mubr.f32.mxu0 %v260_v1  ;;  %v419_v56 = vlaneseq }
  0x5c   :  { %1459 = vmatprep.subr.bf16.mxu0 %v1823_v58 }
  0x5d   :  { %v420_v63 = vshrl.u32 %v419_v56, 7  ;;  %v875_v56 = vld [vmem:[#allocation2 + $0xf0] sm:$0xff] }
  0x5f   :  { %1461 = vmatpush3.bf16.msra.mxu0 %v1823_v58  ;;  %v1888_v1 = vsub.s32 0, %v420_v63 }
  0x60   :  { %1463 = vmatprep.subr.bf16.mxu0 %v1828_v59 }
  0x63   :  { %1465 = vmatpush3.bf16.msra.mxu0 %v1828_v59 }
  0x64   :  { %1467 = vmatprep.subr.bf16.mxu0 %v1834_v60 }
  0x67   :  { %1469 = vmatpush3.bf16.msra.mxu0 %v1834_v60 }
  0x68   :  { %1471 = vmatprep.subr.bf16.mxu0 %v1840_v61 }
  0x6b   :  { %1473 = vmatpush3.bf16.msra.mxu0 %v1840_v61 }
  0x6c   :  { %1475 = vmatprep.subr.bf16.mxu0 %v1846_v62 }
  0x6f   :  { %1477 = vmatpush3.bf16.msra.mxu0 %v1846_v62 }
  0x70   :  { %1479 = vmatprep.subr.bf16.mxu0 %v1869_v3 }
  0x73   :  { %1481 = vmatpush3.bf16.msra.mxu0 %v1869_v3 }
  0x76   :  { %1232 = vmatmul.mubr.f32.vlgmr.msra.gmra.mrb[0].mxu0 %v262_v5  ;;  %v416_v5 = vld [vmem:[#allocation2 + $0x28] sm:$0x1] }
  0x77   :  { %1234 = vmatprep.mubr.f32.mxu0 %v1795_v43 }
  0x7a   :  { %1235 = vmatmul.mubr.f32.gmra.mrb[2].mxu0 %v1798_v44 }
 0x149   :  { %v1233_v21 = vpop.f32.mrb[0].mxu0 }
 0x14a   :  { %v383_v22 = vadd.f32 %v1233_v21, %v979_v20  ;;  %v354_v23 = vpop.f32.mrb[1].mxu0 }
 0x14b   :  { %v382_v24 = vadd.f32 %v979_v20, %v354_v23 }
 0x14c   :  { %v396_v25 = vmul.f32 %v383_v22, %v383_v22 }
 0x14d   :  { %v386_v26 = vadd.f32 %v383_v22, %v382_v24  ;;  %v395_v27 = vmul.f32 %v382_v24, %v382_v24  ;;  %v1236_v28 = vpop.f32.mrb[2].mxu0 }
 0x14e   :  { %v364_v29 = vpop.f32.mrb[3].mxu0  ;;  %v385_v31 = vadd.f32 %v1236_v28, %v979_v20 }
 0x14f   :  { %v399_v30 = vadd.f32 %v396_v25, %v395_v27  ;;  %v384_v32 = vadd.f32 %v979_v20, %v364_v29 }
 0x150   :  { %v398_v35 = vmul.f32 %v385_v31, %v385_v31 }
 0x151   :  { %v387_v33 = vadd.f32 %v386_v26, %v384_v32  ;;  %v397_v34 = vmul.f32 %v384_v32, %v384_v32 }
 0x153   :  { %v388_v36 = vadd.f32 %v387_v33, %v385_v31  ;;  %v400_v37 = vadd.f32 %v399_v30, %v397_v34 }
 0x155   :  { %v389_v38 = vrot.slane %v388_v36, 4  ;;  %v401_v39 = vadd.f32 %v400_v37, %v398_v35 }
 0x157   :  { %v390_v40 = vadd.f32 %v389_v38, %v388_v36  ;;  %v402_v41 = vrot.slane %v401_v39, 4 }
 0x159   :  { %v391_v42 = vrot.slane %v390_v40, 2  ;;  %v403_v43 = vadd.f32 %v402_v41, %v401_v39 }
 0x15b   :  { %v392_v44 = vadd.f32 %v391_v42, %v390_v40  ;;  %v404_v45 = vrot.slane %v403_v43, 2 }
 0x15d   :  { %v393_v46 = vrot.slane %v392_v44, 1  ;;  %v405_v47 = vadd.f32 %v404_v45, %v403_v43 }
 0x15f   :  { %v394_v48 = vadd.f32 %v393_v46, %v392_v44  ;;  %v406_v49 = vrot.slane %v405_v47, 1 }
 0x161   :  { %v407_v50 = vadd.f32 %v406_v49, %v405_v47  ;;  %v408_v51 = vmul.f32 0.03125, %v394_v48 }
 0x163   :  { %v409_v52 = vmul.f32 0.03125, %v407_v50  ;;  %v410_v53 = vmul.f32 %v408_v51, %v408_v51 }
 0x165   :  { %v411_v54 = vsub.f32 %v409_v52, %v410_v53 }
 0x167   :  { %v412_v55 = vadd.f32 1e-05, %v411_v54 }
 0x169   :  { %1625 = vrsqrt.f32 %v412_v55 }
 0x173   :  { %v1626_v2 = vpop.eup %1625 }
 0x174   :  { %v415_v4 = vmul.f32 %v1626_v2, %v414_v0  ;;  %v876_v0 = vld [vmem:[#allocation2 + $0xf8] sm:$0xff]  ;;  %v1682_v2 = vmov 0.0  }
 0x175   :  { %1383 = vmatprep.mubr.msk.f32.mxu0 %vm1681_vm4, %v1682_v2 }
 0x176   :  { %v417_v6 = vmul.f32 %v415_v4, %v408_v51  ;;  %v422_v7 = vrot.slane %v415_v4, %v1888_v1  ;;  %v878_v4 = vld [vmem:[#allocation2 + $0x108] sm:$0xff] }
 0x178   :  { %v418_v8 = vsub.f32 %v416_v5, %v417_v6  ;;  %v425_v9 = vmul.f32 %v422_v7, %v384_v32  ;;  %v423_v10 = vmul.f32 %v422_v7, %v382_v24  ;;  %v424_v11 = vmul.f32 %v422_v7, %v383_v22  ;;  %v984_v5 = vld [vmem:[#allocation2 + $0x78] ss:$0 sm:$0xff] }
 0x179   :  { %v426_v12 = vmul.f32 %v422_v7, %v385_v31 }
 0x17a   :  { %v430_v13 = vrot.slane %v418_v8, %v1888_v1 }
 0x17c   :  { %v433_v14 = vadd.f32 %v430_v13, %v425_v9  ;;  %v431_v16 = vadd.f32 %v430_v13, %v423_v10  ;;  %v432_v20 = vadd.f32 %v430_v13, %v424_v11  ;;  %v434_v21 = vadd.f32 %v430_v13, %v426_v12 }
 0x17e   :  { %v437_v23 = vmax.f32 %v433_v14, 0.0  ;;  %v435_v25 = vmax.f32 %v431_v16, 0.0  ;;  %v436_v26 = vmax.f32 %v432_v20, 0.0  ;;  %v438_v27 = vmax.f32 %v434_v21, 0.0 }
 0x180   :  { %v446_v28 = vrot.slane %v437_v23, 7  ;;  %v443_v29 = vrot.slane %v435_v25, 7  ;;  %v444_v30 = vrot.slane %v436_v26, 7  ;;  %v447_v33 = vrot.slane %v438_v27, 7 }
 0x182   :  { %v445_v34 = vsel %vm34_vm0, %v443_v29, %v444_v30  ;;  %v455_v24 = vsel %vm34_vm0, 0.0, %v443_v29  ;;  %v457_v22 = vsel %vm34_vm0, %v444_v30, 0.0  ;;  %v448_v31 = vsel %vm34_vm0, %v446_v28, %v447_v33 }
 0x183   :  { %v479_v32 = vrot.slane %v455_v24, 1  ;;  %v480_v35 = vrot.slane %v445_v34, 1  ;;  %v482_v36 = vrot.slane %v457_v22, 1  ;;  %v669_v37 = vrot.slane %v457_v22, 2 }
 0x184   :  { %v456_v38 = vsel %vm34_vm0, 0.0, %v446_v28  ;;  %v485_v39 = vrot.slane %v448_v31, 1  ;;  %v458_v40 = vsel %vm34_vm0, %v447_v33, 0.0  ;;  %v666_v41 = vrot.slane %v455_v24, 2 }
 0x185   :  { %v481_v42 = vsel %vm71_vm1, %v479_v32, %v480_v35  ;;  %v483_v43 = vsel %vm71_vm1, %v480_v35, %v482_v36  ;;  %v484_v44 = vrot.slane %v456_v38, 1  ;;  %v487_v45 = vrot.slane %v458_v40, 1 }
 0x186   :  { %1269 = vmatprep.mubr.f32.mxu1 %v481_v42  ;;  %v667_v46 = vrot.slane %v445_v34, 2  ;;  %v671_v47 = vrot.slane %v456_v38, 2  ;;  %v672_v48 = vrot.slane %v448_v31, 2  ;;  %v674_v49 = vrot.slane %v458_v40, 2 }
 0x187   :  { %1270 = vmatmul.mubr.f32.vlgmr.msra.gmra.mrb[0].mxu1 %v483_v43  ;;  %v486_v50 = vsel %vm71_vm1, %v484_v44, %v485_v39  ;;  %v488_v51 = vsel %vm71_vm1, %v485_v39, %v487_v45  ;;  %v822_v45 = vld [vmem:[#allocation2 + $0x80] sm:$0x1] }
 0x188   :  { %1517 = vmatpush3.bf16.msra.mxu1 %v1823_v58  ;;  %1272 = vmatprep.mubr.f32.mxu1 %v486_v50  ;;  %v668_v52 = vsel %vm257_vm2, %v666_v41, %v667_v46  ;;  %v670_v53 = vsel %vm257_vm2, %v667_v46, %v669_v37  ;;  %v673_v54 = vsel %vm257_vm2, %v671_v47, %v672_v48 }
 0x189   :  { %1519 = vmatprep.subr.bf16.mxu1 %v1828_v59  ;;  %v675_v55 = vsel %vm257_vm2, %v672_v48, %v674_v49  ;;  %v1570_v58 = vpack.c.bf16 %v693_v57, %v1878_v15  ;;  %v874_v15 = vld [vmem:[#allocation2 + $0xe8] sm:$0xff] }
 0x18a   :  { %v824_v48 = vld [vmem:[#allocation2 + $0x88] sm:$0x1] }
 0x18b   :  { %1273 = vmatmul.mubr.f32.gmra.mrb[2].mxu1 %v488_v51 }
 0x18c   :  { %1521 = vmatpush3.bf16.msra.mxu1 %v1828_v59  ;;  %1307 = vmatprep.mubr.msk.f32.mxu1 %vm1814_vm3, %v443_v29  ;;  %v694_v59 = vld [vmem:[#allocation2 + $0xd0] sm:$0xff] }
 0x18d   :  { %1523 = vmatprep.subr.bf16.mxu1 %v1834_v60 }
 0x190   :  { %1525 = vmatpush3.bf16.msra.mxu1 %v1834_v60  ;;  %v695_v60 = vld [vmem:[#allocation2 + $0xd8] sm:$0xff] }
 0x191   :  { %1527 = vmatprep.subr.bf16.mxu1 %v1840_v61 }
 0x194   :  { %1529 = vmatpush3.bf16.msra.mxu1 %v1840_v61 }
 0x195   :  { %1531 = vmatprep.subr.bf16.mxu1 %v1846_v62 }
 0x198   :  { %1533 = vmatpush3.bf16.msra.mxu1 %v1846_v62 }
 0x199   :  { %1535 = vmatprep.subr.bf16.mxu1 %v1869_v3 }
 0x19c   :  { %1537 = vmatpush3.bf16.msra.mxu1 %v1869_v3 }
 0x19d   :  { %1539 = vmatprep.subr.bf16.mxu1 %v1882_v17 }
 0x1a0   :  { %1541 = vmatpush3.bf16.msra.mxu1 %v1882_v17 }
 0x1a1   :  { %1543 = vmatprep.subr.bf16.mxu1 %v1884_v18 }
 0x1a4   :  { %1545 = vmatpush3.bf16.msra.mxu1 %v1884_v18 }
 0x1a5   :  { %1547 = vmatprep.subr.bf16.mxu1 %v1840_v61 }
 0x1a7   :  { %1308 = vmatmul.mubr.f32.vlgmr.msra.gmra.mrb[0].mxu1 %v445_v34 }
 0x1a8   :  { %1310 = vmatprep.mubr.msk.f32.mxu1 %vm1814_vm3, %v446_v28  ;;  %1549 = vmatpush3.bf16.msra.mxu1 %v1840_v61  ;;  %v1574_v61 = vpack.c.bf16 %v695_v60, %v694_v59 }
 0x1a9   :  { %1551 = vmatprep.subr.bf16.mxu1 %v1846_v62 }
 0x1ab   :  { %1311 = vmatmul.mubr.f32.gmra.mrb[2].mxu1 %v448_v31 }
 0x1ac   :  { %1553 = vmatpush3.bf16.msra.mxu1 %v1846_v62  ;;  %1345 = vmatprep.mubr.f32.mxu1 %v668_v52  ;;  %v1680_v62 = vmov 0.0|0.0  }
 0x1ad   :  { %1555 = vmatprep.subr.bf16.mxu1 %v1869_v3  ;;  %1578 = vmatprep.subr.bf16.mxu0 %v1680_v62 }
 0x1ae   :  { %1580 = vmatpush3.bf16.msra.mxu0 %v1882_v17 }
 0x1af   :  { %1581 = vmatprep.subr.bf16.mxu0 %v1680_v62 }
 0x1b0   :  { %1557 = vmatpush3.bf16.msra.mxu1 %v1869_v3  ;;  %v873_v3 = vld [vmem:[#allocation2 + $0xe0] sm:$0xff] }
 0x1b1   :  { %1559 = vmatprep.subr.bf16.mxu1 %v1882_v17  ;;  %v1594_v63 = vpack.c.bf16 %v874_v15, %v873_v3 }
 0x1b2   :  { %1583 = vmatpush3.bf16.msra.mxu0 %v1884_v18 }
 0x1b3   :  { %1584 = vmatprep.subr.bf16.mxu0 %v1680_v62 }
 0x1b4   :  { %1561 = vmatpush3.bf16.msra.mxu1 %v1882_v17  ;;  %v1597_v17 = vpack.c.bf16 %v876_v0, %v875_v56 }
 0x1b5   :  { %1563 = vmatprep.subr.bf16.mxu1 %v1884_v18 }
 0x1b6   :  { %1586 = vmatpush3.bf16.msra.mxu0 %v1886_v19 }
 0x1b7   :  { %1587 = vmatprep.subr.bf16.mxu0 %v1680_v62 }
 0x1b8   :  { %1565 = vmatpush3.bf16.msra.mxu1 %v1884_v18  ;;  %v877_v18 = vld [vmem:[#allocation2 + $0x100] sm:$0xff] }
 0x1b9   :  { %1567 = vmatprep.subr.bf16.mxu1 %v1886_v19 }
 0x1ba   :  { %1589 = vmatpush3.bf16.msra.mxu0 %v1570_v58 }
 0x1bb   :  { %1590 = vmatprep.subr.bf16.mxu0 %v1680_v62 }
 0x1bc   :  { %1569 = vmatpush3.bf16.msra.mxu1 %v1886_v19  ;;  %v1600_v19 = vpack.c.bf16 %v878_v4, %v877_v18 }
 0x1bd   :  { %1571 = vmatprep.subr.bf16.mxu1 %v1570_v58 }
 0x1be   :  { %1592 = vmatpush3.bf16.msra.mxu0 %v1574_v61 }
 0x1bf   :  { %1593 = vmatprep.subr.bf16.mxu0 %v1680_v62 }
 0x1c0   :  { %1573 = vmatpush3.bf16.msra.mxu1 %v1570_v58 }
 0x1c1   :  { %1575 = vmatprep.subr.bf16.mxu1 %v1574_v61 }
 0x1c2   :  { %1595 = vmatpush3.bf16.msra.mxu0 %v1594_v63 }
 0x1c3   :  { %1596 = vmatprep.subr.bf16.mxu0 %v1680_v62 }
 0x1c4   :  { %1577 = vmatpush3.bf16.msra.mxu1 %v1574_v61 }
 0x1c6   :  { %1598 = vmatpush3.bf16.msra.mxu0 %v1597_v17 }
 0x1c7   :  { %1346 = vmatmul.mubr.f32.vlgmr.msra.gmra.mrb[0].mxu1 %v670_v53  ;;  %1599 = vmatprep.subr.bf16.mxu0 %v1680_v62 }
 0x1c8   :  { %1348 = vmatprep.mubr.f32.mxu1 %v673_v54 }
 0x1ca   :  { %1601 = vmatpush3.bf16.msra.mxu0 %v1600_v19 }
 0x1cb   :  { %1349 = vmatmul.mubr.f32.gmra.mrb[2].mxu1 %v675_v55 }
 0x29a   :  { %v1347_v6 = vpop.f32.mrb[0].mxu1 }
 0x29b   :  { %v791_v7 = vadd.f32 %v1347_v6, %v984_v5  ;;  %v762_v8 = vpop.f32.mrb[1].mxu1 }
 0x29c   :  { %v790_v9 = vadd.f32 %v984_v5, %v762_v8 }
 0x29d   :  { %v804_v10 = vmul.f32 %v791_v7, %v791_v7 }
 0x29e   :  { %v794_v11 = vadd.f32 %v791_v7, %v790_v9  ;;  %v803_v12 = vmul.f32 %v790_v9, %v790_v9  ;;  %v1350_v13 = vpop.f32.mrb[2].mxu1 }
 0x29f   :  { %v772_v14 = vpop.f32.mrb[3].mxu1  ;;  %v793_v20 = vadd.f32 %v1350_v13, %v984_v5 }
 0x2a0   :  { %v807_v16 = vadd.f32 %v804_v10, %v803_v12  ;;  %v792_v21 = vadd.f32 %v984_v5, %v772_v14  ;;  %v985_v14 = vld [vmem:[#allocation2 + $0xa8] ss:$0 sm:$0xff] }
 0x2a1   :  { %v806_v26 = vmul.f32 %v793_v20, %v793_v20 }
 0x2a2   :  { %v795_v23 = vadd.f32 %v794_v11, %v792_v21  ;;  %v805_v25 = vmul.f32 %v792_v21, %v792_v21 }
 0x2a4   :  { %v796_v27 = vadd.f32 %v795_v23, %v793_v20  ;;  %v808_v28 = vadd.f32 %v807_v16, %v805_v25 }
 0x2a6   :  { %v797_v29 = vrot.slane %v796_v27, 4  ;;  %v809_v30 = vadd.f32 %v808_v28, %v806_v26 }
 0x2a8   :  { %v798_v33 = vadd.f32 %v797_v29, %v796_v27  ;;  %v810_v34 = vrot.slane %v809_v30, 4 }
 0x2aa   :  { %v799_v24 = vrot.slane %v798_v33, 2  ;;  %v811_v22 = vadd.f32 %v810_v34, %v809_v30 }
 0x2ac   :  { %v800_v31 = vadd.f32 %v799_v24, %v798_v33  ;;  %v812_v32 = vrot.slane %v811_v22, 2 }
 0x2ae   :  { %v801_v35 = vrot.slane %v800_v31, 1  ;;  %v813_v36 = vadd.f32 %v812_v32, %v811_v22 }
 0x2b0   :  { %v802_v37 = vadd.f32 %v801_v35, %v800_v31  ;;  %v814_v38 = vrot.slane %v813_v36, 1 }
 0x2b2   :  { %v815_v39 = vadd.f32 %v814_v38, %v813_v36  ;;  %v816_v40 = vmul.f32 0.03125, %v802_v37 }
 0x2b4   :  { %v817_v41 = vmul.f32 0.03125, %v815_v39  ;;  %v818_v42 = vmul.f32 %v816_v40, %v816_v40 }
 0x2b6   :  { %v819_v43 = vsub.f32 %v817_v41, %v818_v42 }
 0x2b8   :  { %v820_v44 = vadd.f32 1e-05, %v819_v43 }
 0x2ba   :  { %1627 = vrsqrt.f32 %v820_v44 }
 0x2c4   :  { %v1628_v46 = vpop.eup %1627 }
 0x2c5   :  { %v823_v47 = vmul.f32 %v1628_v46, %v822_v45 }
 0x2c7   :  { %v825_v49 = vmul.f32 %v823_v47, %v816_v40  ;;  %v830_v50 = vrot.slane %v823_v47, %v1888_v1 }
 0x2c9   :  { %v826_v51 = vsub.f32 %v824_v48, %v825_v49  ;;  %v831_v52 = vmul.f32 %v830_v50, %v790_v9  ;;  %v832_v53 = vmul.f32 %v830_v50, %v791_v7  ;;  %v833_v54 = vmul.f32 %v830_v50, %v792_v21 }
 0x2ca   :  { %v834_v55 = vmul.f32 %v830_v50, %v793_v20 }
 0x2cb   :  { %v838_v57 = vrot.slane %v826_v51, %v1888_v1 }
 0x2cd   :  { %v841_v58 = vadd.f32 %v838_v57, %v833_v54  ;;  %v842_v59 = vadd.f32 %v838_v57, %v834_v55  ;;  %v839_v60 = vadd.f32 %v838_v57, %v831_v52  ;;  %v840_v61 = vadd.f32 %v838_v57, %v832_v53 }
 0x2cf   :  { %v845_v62 = vmax.f32 %v841_v58, 0.0  ;;  %v846_v3 = vmax.f32 %v842_v59, 0.0  ;;  %v843_v15 = vmax.f32 %v839_v60, 0.0  ;;  %v844_v56 = vmax.f32 %v840_v61, 0.0 }
 0x2d1   :  { %v854_v63 = vadd.f32 %v846_v3, %v845_v62  ;;  %v847_v0 = vadd.f32 %v844_v56, %v843_v15 }
 0x2d3   :  { %v855_v2 = vrot.slane %v854_v63, 4  ;;  %v848_v17 = vrot.slane %v847_v0, 4 }
 0x2d5   :  { %v856_v18 = vadd.f32 %v855_v2, %v854_v63  ;;  %v849_v4 = vadd.f32 %v848_v17, %v847_v0 }
 0x2d7   :  { %v857_v19 = vrot.slane %v856_v18, 2  ;;  %v850_v5 = vrot.slane %v849_v4, 2 }
 0x2d9   :  { %v851_v6 = vadd.f32 %v850_v5, %v849_v4  ;;  %v858_v7 = vadd.f32 %v857_v19, %v856_v18 }
 0x2db   :  { %v852_v8 = vrot.slane %v851_v6, 1  ;;  %v859_v1 = vrot.slane %v858_v7, 1 }
 0x2dd   :  { %v853_v9 = vadd.f32 %v852_v8, %v851_v6  ;;  %v860_v10 = vadd.f32 %v859_v1, %v858_v7 }
 0x2df   :  { %v861_v11 = vmul.f32 0.0625, %v853_v9  ;;  %v862_v12 = vmul.f32 0.0625, %v860_v10 }
 0x2e1   :  { %v887_v13 = vsel %vm886_vm5, %v862_v12, %v861_v11 }
 0x2e2   :  { %1384 = vmatmul.mubr.f32.vlgmr.msra.gmra.mrb[4].mxu0 %v887_v13 }
 0x3b5   :  { %v955_v16 = vpop.f32.mrb[4].mxu0 }
 0x3b6   :  { %v956_v20 = vadd.f32 %v985_v14, %v955_v16  ;;  %v1385_v21 = vpop.f32.mrb[5].mxu0 }
 0x3b8   :  { %959 = vst [vmem:[#allocation5] sm:$0x3] %v956_v20 }
 0x3b9   :  { %1662 = shalt.err (!%p1659_p12)
}
 0x3ba   :  { %s1663_s6 = scalar_lea.hbm %s1957_s2, 32 }
 0x3bb   :  { %p1664_p13 = scmp.ne.s32.totalorder %s1957_s2, %s1663_s6  ;;  %p1667_p0 = scmp.lt.u32.totalorder %s1663_s6, %s1957_s2 }
 0x3bd   :  { %p1669_p1 = pnand %p1667_p0, %p1664_p13 }
 0x3bf   :  { %1672 = shalt.err (!%p1669_p1)
}
 0x3c0   :  { %969 = dma.vmem_to_hbm [thread:$0]  %s967_s30, 32, %s1957_s2, [#allocation4]  }
 0x3c1   :  { %1675 = dma.done.wait [#allocation4], 32  }
 0x3c2   :  { %1676 = vsyncadd [#allocation4], 4294967264 }
 0x3c3   :  { %973 = vsyncpa [#allocation3], 1 }
 0x3c4   :  { %974 = vsyncpa [#allocation4], 1 }

</bundles_post_ra>
